<compile_context>
chip_gen: v7x
topology: tpu7x:2x2x1
jax: 0.10.0
libtpu: 0.0.40
codegen_flags: <defaults>
</compile_context>

<pallas_src>
import functools

import jax
import jax.numpy as jnp
import numpy as np
from jax import lax
from jax.experimental import pallas as pl
from jax.experimental.pallas import tpu as pltpu


def _round_up(x, m):
    return ((x + m - 1) // m) * m


def textrnn_kernel(x_ref,      # (chunk_s*b_tile, E)  streamed chunk (mxu dtype)
                   wih_ref,    # (E, H_pad)           = W_ih^T        (mxu dtype)
                   whh_ref,    # (H_pad, H_pad)       = W_hh^T        (mxu dtype)
                   bias_ref,   # (1, H_pad)  f32      = b_ih + b_hh
                   h0_ref,     # (b_tile, H_pad) f32  initial hidden state
                   wlab_ref,   # (H_pad, C_pad) f32   = W_label^T
                   blab_ref,   # (1, C_pad) f32
                   out_ref,    # (b_tile, C_pad) f32  logits (padded)
                   h_ref,      # VMEM scratch (b_tile, H_pad) f32: persists h
                               # across grid steps only
                   gates_ref,  # VMEM scratch (chunk_s*b_tile, H_pad) f32
                   *, seq_len, chunk_s, b_tile, needs_mask, unroll):
    t_chunk = pl.program_id(1)
    mxu_dtype = whh_ref.dtype

    @pl.when(t_chunk == 0)
    def _init():
        h_ref[...] = h0_ref[...]

    # --- Phase 1: hoisted input projection for the whole chunk: one
    # (chunk_s*b_tile, E) x (E, H_pad) MXU matmul (narrow-dtype in, f32 out),
    # loop-invariant bias folded in once. ---------------------------------
    gates_ref[...] = (
        jnp.dot(x_ref[...], wih_ref[...], preferred_element_type=jnp.float32)
        + bias_ref[...])

    # --- Phase 2: serial recurrence. h lives in the loop carry (vregs, no
    # VMEM round-trip per step); one small dot + tanh per timestep. -------
    whh = whh_ref[...]
    if needs_mask:
        # number of valid timesteps in this (possibly tail) chunk
        valid = jnp.minimum(chunk_s, seq_len - t_chunk * chunk_s)

    def step(ts, h):
        row = pl.multiple_of(ts * b_tile, b_tile)          # sublane-aligned
        g_t = gates_ref[pl.ds(row, b_tile), :]              # (b_tile, H_pad) f32
        h_new = jnp.tanh(
            g_t + jnp.dot(h.astype(mxu_dtype), whh,
                          preferred_element_type=jnp.float32))
        if needs_mask:   # padded tail timesteps leave h unchanged
            h_new = jnp.where(ts < valid, h_new, h)
        return h_new

    h_final = lax.fori_loop(0, chunk_s, step, h_ref[...], unroll=unroll)
    h_ref[...] = h_final    # carry across grid steps

    # --- Phase 3: hidden2label on the final hidden state (last chunk only).
    @pl.when(t_chunk == pl.num_programs(1) - 1)
    def _final():
        out_ref[...] = (jnp.dot(h_final, wlab_ref[...],
                                preferred_element_type=jnp.float32)
                        + blab_ref[...])


def textrnn_forward(tokens, embed_table, w_ih, w_hh, b_ih, b_hh,
                    h0, w_lab, b_lab, *, chunk_s=None, b_tile=None,
                    mxu_dtype=jnp.bfloat16, lane_multiple=128):
    """tokens: (B, S) int32. Returns logits (B, C) float32."""
    B, S = tokens.shape
    V, E = embed_table.shape
    H = w_hh.shape[0]
    C = w_lab.shape[0]

    # Lane-padded sizes for the weight / hidden / output dims (use 256 on
    # v6e/v7x production sizes to fill the 2x256^2 MXU).
    H_pad = _round_up(H, lane_multiple)
    C_pad = _round_up(C, lane_multiple)

    # Batch: rounded to a sublane multiple only; E is NOT lane-padded in HBM.
    B_pad = _round_up(B, 8)
    if b_tile is None:
        b_tile = B_pad if B_pad <= 16 else 16   # >1 tile => v7x 2nd TC usable
    b_tile = _round_up(b_tile, 8)
    B_pad = _round_up(B_pad, b_tile)
    num_btiles = B_pad // b_tile

    # Sequence chunking: no divisibility requirement (tail masked in-kernel).
    if chunk_s is None:
        chunk_s = min(S, 256)
    chunk_s = max(1, chunk_s)
    # Keep the x block's second-minor dim a multiple of the native sublane
    # tiling (16 rows for 16-bit operands, 8 for f32).
    sub = 8 * (4 // jnp.dtype(mxu_dtype).itemsize)
    while (chunk_s * b_tile) % sub:
        chunk_s += 1
    num_chunks = -(-S // chunk_s)
    S_pad = num_chunks * chunk_s
    needs_mask = (S_pad != S)

    # Glue: gather the embedding directly into the streamed layout
    # (num_btiles, S_pad*b_tile, E): sequence-major inside each batch tile,
    # no lane padding, narrow dtype -> HBM bytes ~= the real data.
    embed_mxu = embed_table.astype(mxu_dtype)
    tok_pad = jnp.zeros((B_pad, S_pad), jnp.int32).at[:B, :S].set(
        tokens.astype(jnp.int32))
    tok_gsb = (tok_pad.reshape(num_btiles, b_tile, S_pad)
               .transpose(0, 2, 1)
               .reshape(num_btiles, S_pad * b_tile))
    x_seq = embed_mxu[tok_gsb]                 # (num_btiles, S_pad*b_tile, E)

    # Zero-padded, pre-transposed weights (padding keeps the math identical:
    # padded H lanes stay exactly 0 through the recurrence).
    wih_t = jnp.zeros((E, H_pad), mxu_dtype).at[:, :H].set(
        w_ih.T.astype(mxu_dtype))
    whh_t = jnp.zeros((H_pad, H_pad), mxu_dtype).at[:H, :H].set(
        w_hh.T.astype(mxu_dtype))
    bias = jnp.zeros((1, H_pad), jnp.float32).at[0, :H].set(
        (b_ih + b_hh).astype(jnp.float32))
    h0_p = jnp.zeros((B_pad, H_pad), jnp.float32).at[:B, :H].set(
        h0.astype(jnp.float32))
    wlab_t = jnp.zeros((H_pad, C_pad), jnp.float32).at[:H, :C].set(
        w_lab.T.astype(jnp.float32))
    blab = jnp.zeros((1, C_pad), jnp.float32).at[0, :C].set(
        b_lab.astype(jnp.float32))

    itemsize = jnp.dtype(mxu_dtype).itemsize
    cost = pl.CostEstimate(
        flops=2 * S_pad * B_pad * E * H_pad
        + 2 * S_pad * B_pad * H_pad * H_pad
        + 2 * B_pad * H_pad * C_pad,
        transcendentals=S_pad * B_pad * H_pad,
        bytes_accessed=itemsize * (B_pad * S_pad * E + E * H_pad
                                   + H_pad * H_pad)
        + 4 * (H_pad + B_pad * H_pad + H_pad * C_pad + C_pad + B_pad * C_pad),
    )

    kernel = functools.partial(
        textrnn_kernel, seq_len=S, chunk_s=chunk_s, b_tile=b_tile,
        needs_mask=needs_mask, unroll=min(chunk_s, 8))

    out_pad = pl.pallas_call(
        kernel,
        out_shape=jax.ShapeDtypeStruct((B_pad, C_pad), jnp.float32),
        grid_spec=pltpu.PrefetchScalarGridSpec(
            num_scalar_prefetch=0,
            grid=(num_btiles, num_chunks),
            in_specs=[
                # streamed embedded-token chunk (double-buffered by Pallas)
                pl.BlockSpec((None, chunk_s * b_tile, E),
                             lambda b, t: (b, t, 0)),
                # resident weights / biases (constant index maps) and h0
                pl.BlockSpec((E, H_pad), lambda b, t: (0, 0)),
                pl.BlockSpec((H_pad, H_pad), lambda b, t: (0, 0)),
                pl.BlockSpec((1, H_pad), lambda b, t: (0, 0)),
                pl.BlockSpec((b_tile, H_pad), lambda b, t: (b, 0)),
                pl.BlockSpec((H_pad, C_pad), lambda b, t: (0, 0)),
                pl.BlockSpec((1, C_pad), lambda b, t: (0, 0)),
            ],
            out_specs=pl.BlockSpec((b_tile, C_pad), lambda b, t: (b, 0)),
            scratch_shapes=[
                pltpu.VMEM((b_tile, H_pad), jnp.float32),            # hidden
                pltpu.VMEM((chunk_s * b_tile, H_pad), jnp.float32),  # gates
            ],
        ),
        compiler_params=pltpu.CompilerParams(
            # batch tiles are independent (v7x 2nd TC); the sequence axis is a
            # recurrence and must stay sequential + last.
            dimension_semantics=("parallel", "arbitrary")),
        cost_estimate=cost,
    )(x_seq, wih_t, whh_t, bias, h0_p, wlab_t, blab)

    return out_pad[:B, :C]


def textrnn_reference(tokens, embed_table, w_ih, w_hh, b_ih, b_hh,
                      h0, w_lab, b_lab):
    """Pure-JAX reference (matches nn.RNN(tanh) + Linear semantics)."""
    x = embed_table[tokens].astype(jnp.float32)           # (B, S, E)
    x = jnp.transpose(x, (1, 0, 2))                       # (S, B, E)

    def step(h, x_t):
        h_new = jnp.tanh(x_t @ w_ih.T + b_ih + h @ w_hh.T + b_hh)
        return h_new, None

    hn, _ = lax.scan(step, h0, x)
    return hn @ w_lab.T + b_lab


if __name__ == "__main__":
    # Small deterministic config.
    vocab_size = 50
    embedding_dim = 32
    hidden_size = 32
    num_of_class = 4
    batch = 2
    seq_len = 8

    key = jax.random.PRNGKey(0)
    keys = jax.random.split(key, 9)

    tokens = jax.random.randint(keys[0], (batch, seq_len), 0, vocab_size,
                                dtype=jnp.int32)
    embed_table = jax.random.normal(keys[1], (vocab_size, embedding_dim),
                                    dtype=jnp.float32)

    scale = 1.0 / np.sqrt(hidden_size)
    w_ih = jax.random.uniform(keys[2], (hidden_size, embedding_dim),
                              minval=-scale, maxval=scale, dtype=jnp.float32)
    w_hh = jax.random.uniform(keys[3], (hidden_size, hidden_size),
                              minval=-scale, maxval=scale, dtype=jnp.float32)
    b_ih = jax.random.uniform(keys[4], (hidden_size,),
                              minval=-scale, maxval=scale, dtype=jnp.float32)
    b_hh = jax.random.uniform(keys[5], (hidden_size,),
                              minval=-scale, maxval=scale, dtype=jnp.float32)
    w_lab = jax.random.uniform(keys[6], (num_of_class, hidden_size),
                               minval=-scale, maxval=scale, dtype=jnp.float32)
    b_lab = jax.random.uniform(keys[7], (num_of_class,),
                               minval=-scale, maxval=scale, dtype=jnp.float32)
    # PyTorch draws torch.randn h0 per forward; made a deterministic input here.
    h0 = jax.random.normal(keys[8], (batch, hidden_size), dtype=jnp.float32)

    ref = textrnn_reference(tokens, embed_table, w_ih, w_hh, b_ih, b_hh,
                            h0, w_lab, b_lab)

    # 1) Default bf16-MXU-operand path. chunk_s=6 with S=8 exercises the new
    #    non-divisible tail handling (chunks of 6 and 2 valid timesteps).
    logits_bf16 = textrnn_forward(tokens, embed_table, w_ih, w_hh, b_ih, b_hh,
                                  h0, w_lab, b_lab, chunk_s=6,
                                  mxu_dtype=jnp.bfloat16)
    logits_bf16 = jax.block_until_ready(logits_bf16)
    np.testing.assert_allclose(np.asarray(logits_bf16), np.asarray(ref),
                               rtol=5e-2, atol=5e-2)

    # 2) f32 exactness path: chunk_s=4 -> grid=(1, 2), multi-chunk carried
    #    hidden state, bit-close to the f32 reference.
    logits_f32 = textrnn_forward(tokens, embed_table, w_ih, w_hh, b_ih, b_hh,
                                 h0, w_lab, b_lab, chunk_s=4,
                                 mxu_dtype=jnp.float32)
    logits_f32 = jax.block_until_ready(logits_f32)
    np.testing.assert_allclose(np.asarray(logits_f32), np.asarray(ref),
                               rtol=1e-5, atol=1e-5)

    assert logits_bf16.shape == (batch, num_of_class)
    assert logits_f32.shape == (batch, num_of_class)
    print("KERNEL_OK")
</pallas_src>

<mosaic_0001>
module attributes {stable_mosaic.version = 11 : i64} {
  func.func @textrnn_kernel(%arg0: i32, %arg1: i32, %arg2: memref<1x48x32xbf16, #tpu.memory_space<vmem>>, %arg3: memref<32x128xbf16, #tpu.memory_space<vmem>>, %arg4: memref<128x128xbf16, #tpu.memory_space<vmem>>, %arg5: memref<1x128xf32, #tpu.memory_space<vmem>>, %arg6: memref<8x128xf32, #tpu.memory_space<vmem>>, %arg7: memref<128x128xf32, #tpu.memory_space<vmem>>, %arg8: memref<1x128xf32, #tpu.memory_space<vmem>>, %arg9: memref<8x128xf32, #tpu.memory_space<vmem>>, %arg10: memref<8x128xf32, #tpu.memory_space<vmem>>, %arg11: memref<48x128xf32, #tpu.memory_space<vmem>>) attributes {dimension_semantics = [#tpu.dimension_semantics<parallel>, #tpu.dimension_semantics<arbitrary>], iteration_bounds = array<i64: 1, 2>, scalar_prefetch = 0 : i64, scratch_operands = 2 : i64, tpu.core_type = #tpu.core_type<tc>, window_params = [{transform_indices = @transform_0, window_bounds = array<i64: 1, 48, 32>}, {pipeline_mode = #tpu.pipeline_mode<synchronous>, transform_indices = @transform_1, window_bounds = array<i64: 32, 128>}, {pipeline_mode = #tpu.pipeline_mode<synchronous>, transform_indices = @transform_2, window_bounds = array<i64: 128, 128>}, {pipeline_mode = #tpu.pipeline_mode<synchronous>, transform_indices = @transform_3, window_bounds = array<i64: 1, 128>}, {transform_indices = @transform_4, window_bounds = array<i64: 8, 128>}, {pipeline_mode = #tpu.pipeline_mode<synchronous>, transform_indices = @transform_5, window_bounds = array<i64: 128, 128>}, {pipeline_mode = #tpu.pipeline_mode<synchronous>, transform_indices = @transform_6, window_bounds = array<i64: 1, 128>}, {transform_indices = @transform_7, window_bounds = array<i64: 8, 128>}]} {
    %c0_i32 = arith.constant 0 : i32
    %0 = arith.cmpi eq, %arg1, %c0_i32 : i32
    %1 = arith.extui %0 : i1 to i32
    %c0_i32_0 = arith.constant 0 : i32
    %2 = arith.cmpi ne, %1, %c0_i32_0 : i32
    scf.if %2 {
      %c0_38 = arith.constant 0 : index
      %c0_39 = arith.constant 0 : index
      %80 = vector.load %arg6[%c0_38, %c0_39] : memref<8x128xf32, #tpu.memory_space<vmem>>, vector<8x128xf32>
      %c0_40 = arith.constant 0 : index
      %c0_41 = arith.constant 0 : index
      %81 = vector.load %arg10[%c0_40, %c0_41] : memref<8x128xf32, #tpu.memory_space<vmem>>, vector<8x128xf32>
      tpu.vector_store %arg10[%c0_40, %c0_41], %80 {strides = array<i32>} : memref<8x128xf32, #tpu.memory_space<vmem>>, vector<8x128xf32>,
    } else {
    }
    %c0 = arith.constant 0 : index
    %c0_1 = arith.constant 0 : index
    %c0_2 = arith.constant 0 : index
    %3 = vector.load %arg2[%c0, %c0_1, %c0_2] : memref<1x48x32xbf16, #tpu.memory_space<vmem>>, vector<1x48x32xbf16>
    %4 = vector.shape_cast %3 : vector<1x48x32xbf16> to vector<48x32xbf16>
    %c0_3 = arith.constant 0 : index
    %c0_4 = arith.constant 0 : index
    %5 = vector.load %arg3[%c0_3, %c0_4] : memref<32x128xbf16, #tpu.memory_space<vmem>>, vector<32x128xbf16>
    %cst = arith.constant dense<0.000000e+00> : vector<48x128xf32>
    %6 = tpu.matmul %4, %5, %cst {dimension_numbers = #tpu.dot_dimension_numbers<[1], [0], [0], [1], [0, 0, 1, 1], [], []>} : vector<48x32xbf16>, vector<32x128xbf16>, vector<48x128xf32> -> vector<48x128xf32>
    %c0_5 = arith.constant 0 : index
    %c0_6 = arith.constant 0 : index
    %7 = vector.load %arg5[%c0_5, %c0_6] : memref<1x128xf32, #tpu.memory_space<vmem>>, vector<1x128xf32>
    %8 = vector.broadcast %7 : vector<1x128xf32> to vector<48x128xf32>
    %9 = arith.addf %6, %8 : vector<48x128xf32>
    %c0_7 = arith.constant 0 : index
    %c0_8 = arith.constant 0 : index
    %10 = vector.load %arg11[%c0_7, %c0_8] : memref<48x128xf32, #tpu.memory_space<vmem>>, vector<48x128xf32>
    tpu.vector_store %arg11[%c0_7, %c0_8], %9 {strides = array<i32>} : memref<48x128xf32, #tpu.memory_space<vmem>>, vector<48x128xf32>,
    %c0_9 = arith.constant 0 : index
    %c0_10 = arith.constant 0 : index
    %11 = vector.load %arg4[%c0_9, %c0_10] : memref<128x128xbf16, #tpu.memory_space<vmem>>, vector<128x128xbf16>
    %c6_i32 = arith.constant 6 : i32
    %12 = arith.muli %arg1, %c6_i32 : i32
    %c8_i32 = arith.constant 8 : i32
    %13 = arith.subi %c8_i32, %12 : i32
    %c6_i32_11 = arith.constant 6 : i32
    %14 = arith.minsi %c6_i32_11, %13 : i32
    %c0_12 = arith.constant 0 : index
    %c0_13 = arith.constant 0 : index
    %15 = vector.load %arg10[%c0_12, %c0_13] : memref<8x128xf32, #tpu.memory_space<vmem>>, vector<8x128xf32>
    %c0_i32_14 = arith.constant 0 : i32
    %c8_i32_15 = arith.constant 8 : i32
    %16 = arith.muli %c0_i32_14, %c8_i32_15 : i32
    %17 = tpu.assume_multiple %16, 8 : i32
    %18 = arith.index_cast %17 : i32 to index
    %c0_16 = arith.constant 0 : index
    %19 = vector.load %arg11[%18, %c0_16] : memref<48x128xf32, #tpu.memory_space<vmem>>, vector<8x128xf32>
    %20 = arith.truncf %15 : vector<8x128xf32> to vector<8x128xbf16>
    %cst_17 = arith.constant dense<0.000000e+00> : vector<8x128xf32>
    %21 = tpu.matmul %20, %11, %cst_17 {dimension_numbers = #tpu.dot_dimension_numbers<[1], [0], [0], [1], [0, 0, 1, 1], [], []>} : vector<8x128xbf16>, vector<128x128xbf16>, vector<8x128xf32> -> vector<8x128xf32>
    %22 = arith.addf %19, %21 : vector<8x128xf32>
    %23 = math.tanh %22 : vector<8x128xf32>
    %24 = arith.cmpi slt, %c0_i32_14, %14 : i32
    %25 = arith.select %24, %23, %15 : vector<8x128xf32>
    %c1_i32 = arith.constant 1 : i32
    %c8_i32_18 = arith.constant 8 : i32
    %26 = arith.muli %c1_i32, %c8_i32_18 : i32
    %27 = tpu.assume_multiple %26, 8 : i32
    %28 = arith.index_cast %27 : i32 to index
    %c0_19 = arith.constant 0 : index
    %29 = vector.load %arg11[%28, %c0_19] : memref<48x128xf32, #tpu.memory_space<vmem>>, vector<8x128xf32>
    %30 = arith.truncf %25 : vector<8x128xf32> to vector<8x128xbf16>
    %cst_20 = arith.constant dense<0.000000e+00> : vector<8x128xf32>
    %31 = tpu.matmul %30, %11, %cst_20 {dimension_numbers = #tpu.dot_dimension_numbers<[1], [0], [0], [1], [0, 0, 1, 1], [], []>} : vector<8x128xbf16>, vector<128x128xbf16>, vector<8x128xf32> -> vector<8x128xf32>
    %32 = arith.addf %29, %31 : vector<8x128xf32>
    %33 = math.tanh %32 : vector<8x128xf32>
    %34 = arith.cmpi slt, %c1_i32, %14 : i32
    %35 = arith.select %34, %33, %25 : vector<8x128xf32>
    %c2_i32 = arith.constant 2 : i32
    %c8_i32_21 = arith.constant 8 : i32
    %36 = arith.muli %c2_i32, %c8_i32_21 : i32
    %37 = tpu.assume_multiple %36, 8 : i32
    %38 = arith.index_cast %37 : i32 to index
    %c0_22 = arith.constant 0 : index
    %39 = vector.load %arg11[%38, %c0_22] : memref<48x128xf32, #tpu.memory_space<vmem>>, vector<8x128xf32>
    %40 = arith.truncf %35 : vector<8x128xf32> to vector<8x128xbf16>
    %cst_23 = arith.constant dense<0.000000e+00> : vector<8x128xf32>
    %41 = tpu.matmul %40, %11, %cst_23 {dimension_numbers = #tpu.dot_dimension_numbers<[1], [0], [0], [1], [0, 0, 1, 1], [], []>} : vector<8x128xbf16>, vector<128x128xbf16>, vector<8x128xf32> -> vector<8x128xf32>
    %42 = arith.addf %39, %41 : vector<8x128xf32>
    %43 = math.tanh %42 : vector<8x128xf32>
    %44 = arith.cmpi slt, %c2_i32, %14 : i32
    %45 = arith.select %44, %43, %35 : vector<8x128xf32>
    %c3_i32 = arith.constant 3 : i32
    %c8_i32_24 = arith.constant 8 : i32
    %46 = arith.muli %c3_i32, %c8_i32_24 : i32
    %47 = tpu.assume_multiple %46, 8 : i32
    %48 = arith.index_cast %47 : i32 to index
    %c0_25 = arith.constant 0 : index
    %49 = vector.load %arg11[%48, %c0_25] : memref<48x128xf32, #tpu.memory_space<vmem>>, vector<8x128xf32>
    %50 = arith.truncf %45 : vector<8x128xf32> to vector<8x128xbf16>
    %cst_26 = arith.constant dense<0.000000e+00> : vector<8x128xf32>
    %51 = tpu.matmul %50, %11, %cst_26 {dimension_numbers = #tpu.dot_dimension_numbers<[1], [0], [0], [1], [0, 0, 1, 1], [], []>} : vector<8x128xbf16>, vector<128x128xbf16>, vector<8x128xf32> -> vector<8x128xf32>
    %52 = arith.addf %49, %51 : vector<8x128xf32>
    %53 = math.tanh %52 : vector<8x128xf32>
    %54 = arith.cmpi slt, %c3_i32, %14 : i32
    %55 = arith.select %54, %53, %45 : vector<8x128xf32>
    %c4_i32 = arith.constant 4 : i32
    %c8_i32_27 = arith.constant 8 : i32
    %56 = arith.muli %c4_i32, %c8_i32_27 : i32
    %57 = tpu.assume_multiple %56, 8 : i32
    %58 = arith.index_cast %57 : i32 to index
    %c0_28 = arith.constant 0 : index
    %59 = vector.load %arg11[%58, %c0_28] : memref<48x128xf32, #tpu.memory_space<vmem>>, vector<8x128xf32>
    %60 = arith.truncf %55 : vector<8x128xf32> to vector<8x128xbf16>
    %cst_29 = arith.constant dense<0.000000e+00> : vector<8x128xf32>
    %61 = tpu.matmul %60, %11, %cst_29 {dimension_numbers = #tpu.dot_dimension_numbers<[1], [0], [0], [1], [0, 0, 1, 1], [], []>} : vector<8x128xbf16>, vector<128x128xbf16>, vector<8x128xf32> -> vector<8x128xf32>
    %62 = arith.addf %59, %61 : vector<8x128xf32>
    %63 = math.tanh %62 : vector<8x128xf32>
    %64 = arith.cmpi slt, %c4_i32, %14 : i32
    %65 = arith.select %64, %63, %55 : vector<8x128xf32>
    %c5_i32 = arith.constant 5 : i32
    %c8_i32_30 = arith.constant 8 : i32
    %66 = arith.muli %c5_i32, %c8_i32_30 : i32
    %67 = tpu.assume_multiple %66, 8 : i32
    %68 = arith.index_cast %67 : i32 to index
    %c0_31 = arith.constant 0 : index
    %69 = vector.load %arg11[%68, %c0_31] : memref<48x128xf32, #tpu.memory_space<vmem>>, vector<8x128xf32>
    %70 = arith.truncf %65 : vector<8x128xf32> to vector<8x128xbf16>
    %cst_32 = arith.constant dense<0.000000e+00> : vector<8x128xf32>
    %71 = tpu.matmul %70, %11, %cst_32 {dimension_numbers = #tpu.dot_dimension_numbers<[1], [0], [0], [1], [0, 0, 1, 1], [], []>} : vector<8x128xbf16>, vector<128x128xbf16>, vector<8x128xf32> -> vector<8x128xf32>
    %72 = arith.addf %69, %71 : vector<8x128xf32>
    %73 = math.tanh %72 : vector<8x128xf32>
    %74 = arith.cmpi slt, %c5_i32, %14 : i32
    %75 = arith.select %74, %73, %65 : vector<8x128xf32>
    %c6_i32_33 = arith.constant 6 : i32
    %c0_34 = arith.constant 0 : index
    %c0_35 = arith.constant 0 : index
    %76 = vector.load %arg10[%c0_34, %c0_35] : memref<8x128xf32, #tpu.memory_space<vmem>>, vector<8x128xf32>
    tpu.vector_store %arg10[%c0_34, %c0_35], %75 {strides = array<i32>} : memref<8x128xf32, #tpu.memory_space<vmem>>, vector<8x128xf32>,
    %c1_i32_36 = arith.constant 1 : i32
    %77 = arith.cmpi eq, %arg1, %c1_i32_36 : i32
    %78 = arith.extui %77 : i1 to i32
    %c0_i32_37 = arith.constant 0 : i32
    %79 = arith.cmpi ne, %78, %c0_i32_37 : i32
    scf.if %79 {
      %c0_38 = arith.constant 0 : index
      %c0_39 = arith.constant 0 : index
      %80 = vector.load %arg7[%c0_38, %c0_39] : memref<128x128xf32, #tpu.memory_space<vmem>>, vector<128x128xf32>
      %cst_40 = arith.constant dense<0.000000e+00> : vector<8x128xf32>
      %81 = tpu.matmul %75, %80, %cst_40 {dimension_numbers = #tpu.dot_dimension_numbers<[1], [0], [0], [1], [0, 0, 1, 1], [], []>} : vector<8x128xf32>, vector<128x128xf32>, vector<8x128xf32> -> vector<8x128xf32>
      %c0_41 = arith.constant 0 : index
      %c0_42 = arith.constant 0 : index
      %82 = vector.load %arg8[%c0_41, %c0_42] : memref<1x128xf32, #tpu.memory_space<vmem>>, vector<1x128xf32>
      %83 = vector.broadcast %82 : vector<1x128xf32> to vector<8x128xf32>
      %84 = arith.addf %81, %83 : vector<8x128xf32>
      %c0_43 = arith.constant 0 : index
      %c0_44 = arith.constant 0 : index
      %85 = vector.load %arg9[%c0_43, %c0_44] : memref<8x128xf32, #tpu.memory_space<vmem>>, vector<8x128xf32>
      tpu.vector_store %arg9[%c0_43, %c0_44], %84 {strides = array<i32>} : memref<8x128xf32, #tpu.memory_space<vmem>>, vector<8x128xf32>,
    } else {
    }
    return
  }
  func.func @transform_0(%arg0: i32, %arg1: i32) -> (i32, i32, i32) {
    %c0_i32 = arith.constant 0 : i32
    %c0_i32_0 = arith.constant 0 : i32
    return %arg0, %arg1, %c0_i32 : i32, i32, i32
  }
  func.func @transform_1(%arg0: i32, %arg1: i32) -> (i32, i32) {
    %c0_i32 = arith.constant 0 : i32
    %c0_i32_0 = arith.constant 0 : i32
    %c0_i32_1 = arith.constant 0 : i32
    return %c0_i32, %c0_i32_0 : i32, i32
  }
  func.func @transform_2(%arg0: i32, %arg1: i32) -> (i32, i32) {
    %c0_i32 = arith.constant 0 : i32
    %c0_i32_0 = arith.constant 0 : i32
    %c0_i32_1 = arith.constant 0 : i32
    return %c0_i32, %c0_i32_0 : i32, i32
  }
  func.func @transform_3(%arg0: i32, %arg1: i32) -> (i32, i32) {
    %c0_i32 = arith.constant 0 : i32
    %c0_i32_0 = arith.constant 0 : i32
    %c0_i32_1 = arith.constant 0 : i32
    return %c0_i32, %c0_i32_0 : i32, i32
  }
  func.func @transform_4(%arg0: i32, %arg1: i32) -> (i32, i32) {
    %c0_i32 = arith.constant 0 : i32
    %c0_i32_0 = arith.constant 0 : i32
    return %arg0, %c0_i32 : i32, i32
  }
  func.func @transform_5(%arg0: i32, %arg1: i32) -> (i32, i32) {
    %c0_i32 = arith.constant 0 : i32
    %c0_i32_0 = arith.constant 0 : i32
    %c0_i32_1 = arith.constant 0 : i32
    return %c0_i32, %c0_i32_0 : i32, i32
  }
  func.func @transform_6(%arg0: i32, %arg1: i32) -> (i32, i32) {
    %c0_i32 = arith.constant 0 : i32
    %c0_i32_0 = arith.constant 0 : i32
    %c0_i32_1 = arith.constant 0 : i32
    return %c0_i32, %c0_i32_0 : i32, i32
  }
  func.func @transform_7(%arg0: i32, %arg1: i32) -> (i32, i32) {
    %c0_i32 = arith.constant 0 : i32
    %c0_i32_0 = arith.constant 0 : i32
    return %arg0, %c0_i32 : i32, i32
  }
}

</mosaic_0001>

<bundles_post_ra>
// kernel: tpu_custom_call.1
= control target key start
LH: loop header
LB: loop body
LE: loop exit
PB: predicated region body
PF: predicated region fallthrough
CT: control target
= control target key end

     0   :  { %12 = vsyncpa [#allocation5], 0  ;;  %s1985_s0 = inlined_call_operand.vmem [shape: bf16[1,96,32], index: 0, kind: input, shape index: {}]   ;;  %s1986_s1 = inlined_call_operand.hbm [shape: bf16[32,128], index: 1, kind: input, shape index: {}]   ;;  %s1987_s2 = inlined_call_operand.vmem [shape: bf16[128,128], index: 2, kind: input, shape index: {}]   ;;  %s1988_s3 = inlined_call_operand.vmem [shape: f32[1,128], index: 3, kind: input, shape index: {}]   ;;  %s1989_s4 = inlined_call_operand.vmem [shape: f32[8,128], index: 4, kind: input, shape index: {}]   ;;  %s1990_s5 = inlined_call_operand.hbm [shape: f32[128,128], index: 5, kind: input, shape index: {}]   ;;  %s1991_s6 = inlined_call_operand.vmem [shape: f32[1,128], index: 6, kind: input, shape index: {}]   ;;  %s1992_s7 = inlined_call_operand.hbm [shape: f32[8,128], index: 7, kind: output, shape index: {}]  }
   0x1   :  { %13 = vsyncpa [#allocation8], 0 }
   0x2   :  { %14 = vsyncpa [#allocation6], 0  ;;  %s1641_s24 = smov 0   ;;  %s1643_s25 = smov 0  }
   0x3   :  { %s1645_s26 = smov 0  }
   0x4 LB: > { %s1038_s27 = sadd.s32 4294967295, %s1587_s26   ;;  %s29_s28 = sadd.s32 1, %s1583_s25  ;;  %s1587_s26 = sphi %s1645_s26, %s20_s26   ;;  %s1583_s25 = sphi %s1643_s25, %s2003_s25   ;;  %s1579_s24 = sphi %s1641_s24, %s2002_s24  }
   0x5   : > { %p30_p0 = scmp.ge.s32.totalorder %s29_s28, 2  ;;  %p1039_p1 = scmp.ge.s32.totalorder %s1587_s26, 1 }
   0x6   : > { %p222_p2 = scmp.lt.s32.totalorder %s1587_s26, 3  ;;  %p1668_p4 = scmp.eq.s32.totalorder %s1038_s27, 0 }
   0x7   : > { %s2005_s28 = smov (%p30_p0, %s29_s28), 0  ;;  %s1589_s8 = smov [#allocation4]  }
   0x8   : > { %p1662_p3 = pnand %p1039_p1, %p222_p2  ;;  %s234_s9 = sshll.u32 %s1589_s8, 4  ;;  %s235_s9 = int_to_ptr.vmem [resolvable:$true] %s234_s9 }
   0x9   : > { %s1997_s30 = scalar_select %p1668_p4, 1, 0 }
   0xa   : > { %s1996_s29 = scalar_select %p1662_p3, 1, 0 }
   0xb   : > { %p1397_p5 = pneg %p1662_p3  ;;  %s1590_s11 = smov [#allocation7]  }
   0xc   : > { %s260_s12 = sshll.u32 %s1590_s11, 4  ;;  %s1471_s15 = scalar_lea.hbm %s1986_s1, 256  ;;  %s1680_s12 = int_to_ptr.vmem [resolvable:$true] %s260_s12 }
   0xd   : > { %p1676_p6 = pnand %p1668_p4, %p1397_p5  ;;  %p1472_p7 = scmp.ne.s32.totalorder %s1986_s1, %s1471_s15 }
   0xe   : > { %p1478_p11 = scmp.lt.u32.totalorder %s1471_s15, %s1986_s1 }
   0xf   : > { %p1473_p8 = pneg %p1676_p6 }
  0x11   : > { %p1474_p9 = pnand %p1473_p8, %p1472_p7 }
  0x13   : > { %p1475_p10 = pneg %p1474_p9 }
  0x15   : > { %p1480_p12 = pnand %p1478_p11, %p1475_p10 }
  0x17   : > { %1483 = shalt.err (!%p1480_p12)
}
  0x18   : > { %s1484_s20 = scalar_lea.vmem %s235_s9, 256  ;;  %p1492_p2 = scmp.lt.s32.totalorder %s235_s9, %s235_s9 }
  0x19   : > { %p1485_p13 = scmp.ne.s32.totalorder %s235_s9, %s1484_s20  ;;  %p1493_p5 = scmp.lt.s32.totalorder %s1484_s20, %s1484_s20 }
  0x1b   : > { %p1487_p0 = pnand %p1485_p13, %p1473_p8  ;;  %p1494_p4 = por %p1493_p5, %p1492_p2 }
  0x1d   : > { %p1488_p1 = pneg %p1487_p0 }
  0x1f   : > { %p1495_p3 = pnand %p1494_p4, %p1488_p1 }
  0x21   : > { %1498 = shalt.err (!%p1495_p3)
}
  0x22   : > { %s1591_s21 = smov 64   ;;  %s1592_s22 = smov 4  }
  0x23   : > { %1400 = dma.hbm_to_vmem [thread:$0]  (!%p1676_p6), %s1986_s1, 256, %s235_s9, [#allocation5], %s1591_s21, %s1591_s21, %s1592_s22  }
  0x24   : > { %s1499_s14 = scalar_lea.hbm %s1990_s5, 2048 }
  0x25   : > { %p1500_p7 = scmp.ne.s32.totalorder %s1990_s5, %s1499_s14  ;;  %p1506_p9 = scmp.lt.u32.totalorder %s1499_s14, %s1990_s5 }
  0x27   : > { %p1502_p3 = pnand %p1500_p7, %p1473_p8 }
  0x29   : > { %p1503_p4 = pneg %p1502_p3 }
  0x2b   : > { %p1508_p10 = pnand %p1506_p9, %p1503_p4 }
  0x2d   : > { %1511 = shalt.err (!%p1508_p10)
}
  0x2e   : > { %s1512_s9 = scalar_lea.vmem %s1680_s12, 2048  ;;  %p1520_p0 = scmp.lt.s32.totalorder %s1680_s12, %s1680_s12 }
  0x2f   : > { %p1513_p11 = scmp.ne.s32.totalorder %s1680_s12, %s1512_s9  ;;  %p1521_p1 = scmp.lt.s32.totalorder %s1512_s9, %s1512_s9 }
  0x31   : > { %p1515_p12 = pnand %p1513_p11, %p1473_p8  ;;  %p1522_p2 = por %p1521_p1, %p1520_p0 }
  0x33   : > { %p1516_p13 = pneg %p1515_p12 }
  0x35   : > { %p1523_p5 = pnand %p1522_p2, %p1516_p13 }
  0x37   : > { %1526 = shalt.err (!%p1523_p5)
}
  0x38   : > { %s1593_s19 = smov 128   ;;  %s1594_s20 = smov 8  }
  0x39   : > { %1403 = dma.hbm_to_vmem [thread:$0]  (!%p1676_p6), %s1990_s5, 2048, %s1680_s12, [#allocation8], %s1593_s19, %s1593_s19, %s1594_s20  }
  0x3a   : > { %p1999_p7 = scmp.ne.s32.totalorder %s1996_s29, 0 }
  0x3b   : > { %p2000_p8 = scmp.ne.s32.totalorder (!%p1999_p7), %s1997_s30, 0 }
  0x3c   : > { %292 = sbr.rel (%p1999_p7) target bundleno = 1718 (0x6b6), region = 48 }
  0x43   : > { %1566 = dma.done.wait (%p2000_p8), [#allocation5], 256  }
  0x44   : > { %1568 = vsyncadd (%p2000_p8), [#allocation5], 4294967040 }
  0x45   : > { %1570 = dma.done.wait (%p2000_p8), [#allocation8], 2048  }
  0x46   : > { %1572 = vsyncadd (%p2000_p8), [#allocation8], 4294965248  ;;  %s1740_s10 = smul.u32 6, %s1579_s24  ;;  %p1048_p3 = scmp.ne.s32.totalorder %s1579_s24, 0 }
  0x47   : > { %v350_v0 = vld [vmem:[%s1989_s4] sm:$0xff] (!%p1048_p3) }
  0x48   : > { %p334_p6 = scmp.lt.s32.totalorder %s1740_s10, 11  ;;  %349 = sbr.rel (%p1048_p3) target bundleno = 79 (0x4f), region = 60  ;;  %351 = vst [vmem:[#allocation2] sm:$0xff] (!%p1048_p3), %v350_v0 }
  0x4a   : > { %s335_s29 = scalar_select %p334_p6, %s1740_s10, 11 }
  0x4c   : > { %s1047_s12 = sshll.u32 %s335_s29, 2 }
  0x4d   : > { %s1747_s11 = scalar_lea.vmem %s1985_s0, %s1047_s12 }
  0x4f PF: > { %v1756_v1 = vld [vmem:[%s1987_s2] sm:$0xff]   ;;  %v1595_v2 = vmov 0.0   ;;  %v1764_v3 = vld [vmem:[%s1987_s2 + $0x8] sm:$0xff]   ;;  %vm1596_vm0 = vmmov 0   ;;  %v1775_v5 = vld [vmem:[%s1987_s2 + $0x10] sm:$0xff]   ;;  %vm396_vm1 = vcmask 261120  }
  0x50   : > { %1206 = vmatprep.subr.bf16.mxu1 %v1595_v2  ;;  %1190 = vmatprep.subr.bf16.mxu0 %v1595_v2  ;;  %v1451_v4 = vld [vmem:[#allocation4] sm:$0xff]   ;;  %v1453_v6 = vld [vmem:[#allocation4 + $0x8] sm:$0xff]   ;;  %v1782_v7 = vld [vmem:[%s1987_s2 + $0x18] sm:$0xff]   ;;  %s1870_s16 = ssub.s32 8, %s1740_s10  ;;  %p1096_p0 = scmp.ne.s32.totalorder %s1579_s24, 1 }
  0x51   : > { %1207 = vmatpush3.bf16.msra.mxu1 %v1756_v1  ;;  %1194 = vmatprep.mubr.msk.bf16.mxu0 %vm1596_vm0, %v1595_v2  ;;  %v1455_v8 = vld [vmem:[%s1747_s11] sm:$0xff]   ;;  %v1804_v10 = vld [vmem:[%s1987_s2 + $0x28] sm:$0xff]   ;;  %v1813_v11 = vld [vmem:[%s1987_s2 + $0x30] sm:$0xff]   ;;  %p1066_p4 = scmp.gt.s32.totalorder %s1870_s16, 0  ;;  %p1071_p9 = scmp.gt.s32.totalorder %s1870_s16, 1  ;;  %vm1598_vm8 = vmmov (!%p1096_p0), 0  }
  0x52   : > { %1208 = vmatprep.subr.bf16.mxu1 %v1595_v2  ;;  %1222 = vmatprep.mubr.msk.bf16.mxu1 %vm1596_vm0, %v1595_v2  ;;  %v1792_v9 = vld [vmem:[%s1987_s2 + $0x20] sm:$0xff]   ;;  %v1822_v12 = vld [vmem:[%s1987_s2 + $0x38] sm:$0xff]   ;;  %v1457_v15 = vld [vmem:[%s1747_s11 + $0x8] sm:$0xff]   ;;  %p1076_p10 = scmp.gt.s32.totalorder %s1870_s16, 2  ;;  %p1081_p11 = scmp.gt.s32.totalorder %s1870_s16, 3 }
  0x53   : > { %1191 = vmatpush3.bf16.msra.mxu0 %v1451_v4  ;;  %v489_v13 = vld [vmem:[#allocation2] sm:$0xff]  ;;  %v1458_v16 = vld [vmem:[%s1747_s11 + $0x10] sm:$0xff]   ;;  %s1103_s11 = scalar_select %p1066_p4, 1, 0 }
  0x54   : > { %1192 = vmatprep.subr.bf16.mxu0 %v1595_v2  ;;  %v491_v14 = vpack.c.bf16 %v489_v13, %v489_v13  ;;  %v1866_v21 = vld [vmem:[%s1988_s3] ss:$0 sm:$0xff]  ;;  %s1105_s10 = scalar_select %p1071_p9, 1, 0 }
  0x55   : > { %1209 = vmatpush3.bf16.msra.mxu1 %v1764_v3  ;;  %v584_v28 = vstv %s1103_s11  ;;  %s1107_s17 = scalar_select %p1076_p10, 1, 0 }
  0x56   : > { %1210 = vmatprep.subr.bf16.mxu1 %v1595_v2  ;;  %vm585_vm2 = vcmp.eq.s32.totalorder %v584_v28, 1  ;;  %v634_v46 = vstv %s1105_s10  ;;  %s1109_s18 = scalar_select %p1081_p11, 1, 0 }
  0x57   : > { %1193 = vmatpush3.bf16.msra.mxu0 %v1453_v6  ;;  %vm635_vm3 = vcmp.eq.s32.totalorder %v634_v46, 1  ;;  %v684_v56 = vstv %s1107_s17  ;;  %p1086_p12 = scmp.gt.s32.totalorder %s1870_s16, 4  ;;  %p1091_p13 = scmp.gt.s32.totalorder %s1870_s16, 5  ;;  %v844_v28 = vld [vmem:[#allocation7 + $0x10] sm:$0xff] (!%p1096_p0)  ;;  %v855_v46 = vld [vmem:[#allocation7 + $0x68] sm:$0xff] (!%p1096_p0) }
  0x58   : > { %1226 = vmatprep.subr.bf16.mxu0 %v1595_v2  ;;  %vm685_vm4 = vcmp.eq.s32.totalorder %v684_v56, 1 }
  0x59   : > { %1211 = vmatpush3.bf16.msra.mxu1 %v1775_v5  ;;  %s1111_s9 = scalar_select %p1086_p12, 1, 0 }
  0x5a   : > { %1212 = vmatprep.subr.bf16.mxu1 %v1595_v2  ;;  %1195 = vmatmul.mubr.msk.bf16.vlgmr.msra.gmra.mrb[0].mxu0 %vm396_vm1, %v1455_v8  ;;  %s1113_s19 = scalar_select %p1091_p13, 1, 0 }
  0x5b   : > { %1227 = vmatpush3.bf16.msra.mxu0 %v1756_v1  ;;  %1198 = vmatprep.mubr.msk.bf16.mxu0 %vm1596_vm0, %v1595_v2 }
  0x5c   : > { %1228 = vmatprep.subr.bf16.mxu0 %v1595_v2 }
  0x5d   : > { %1213 = vmatpush3.bf16.msra.mxu1 %v1782_v7 }
  0x5e   : > { %1214 = vmatprep.subr.bf16.mxu1 %v1595_v2 }
  0x5f   : > { %1229 = vmatpush3.bf16.msra.mxu0 %v1764_v3 }
  0x60   : > { %1230 = vmatprep.subr.bf16.mxu0 %v1595_v2 }
  0x61   : > { %1215 = vmatpush3.bf16.msra.mxu1 %v1792_v9 }
  0x62   : > { %1216 = vmatprep.subr.bf16.mxu1 %v1595_v2  ;;  %1199 = vmatmul.mubr.msk.bf16.gmra.mrb[4].mxu0 %vm396_vm1, %v1457_v15 }
  0x63   : > { %1231 = vmatpush3.bf16.msra.mxu0 %v1775_v5  ;;  %1202 = vmatprep.mubr.msk.bf16.mxu0 %vm1596_vm0, %v1595_v2 }
  0x64   : > { %1232 = vmatprep.subr.bf16.mxu0 %v1595_v2 }
  0x65   : > { %1217 = vmatpush3.bf16.msra.mxu1 %v1804_v10 }
  0x66   : > { %1218 = vmatprep.subr.bf16.mxu1 %v1595_v2 }
  0x67   : > { %1233 = vmatpush3.bf16.msra.mxu0 %v1782_v7 }
  0x68   : > { %1234 = vmatprep.subr.bf16.mxu0 %v1595_v2 }
  0x69   : > { %1219 = vmatpush3.bf16.msra.mxu1 %v1813_v11 }
  0x6a   : > { %1220 = vmatprep.subr.bf16.mxu1 %v1595_v2  ;;  %1203 = vmatmul.mubr.msk.bf16.gmra.mrb[8].mxu0 %vm396_vm1, %v1458_v16 }
  0x6b   : > { %1235 = vmatpush3.bf16.msra.mxu0 %v1792_v9  ;;  %1242 = vmatprep.mubr.msk.bf16.mxu0 %vm1596_vm0, %v1595_v2 }
  0x6c   : > { %1236 = vmatprep.subr.bf16.mxu0 %v1595_v2 }
  0x6d   : > { %1221 = vmatpush3.bf16.msra.mxu1 %v1822_v12 }
  0x6e   : > { %1246 = vmatprep.subr.bf16.mxu1 %v1595_v2 }
  0x6f   : > { %1237 = vmatpush3.bf16.msra.mxu0 %v1804_v10 }
  0x70   : > { %1223 = vmatmul.mubr.bf16.vlgmr.msra.gmra.mrb[0].mxu1 %v491_v14  ;;  %1238 = vmatprep.subr.bf16.mxu0 %v1595_v2 }
  0x71   : > { %1247 = vmatpush3.bf16.msra.mxu1 %v1756_v1  ;;  %1262 = vmatprep.mubr.msk.bf16.mxu1 %vm1596_vm0, %v1595_v2 }
  0x72   : > { %1248 = vmatprep.subr.bf16.mxu1 %v1595_v2 }
  0x73   : > { %1239 = vmatpush3.bf16.msra.mxu0 %v1813_v11 }
  0x74   : > { %1240 = vmatprep.subr.bf16.mxu0 %v1595_v2 }
  0x75   : > { %1249 = vmatpush3.bf16.msra.mxu1 %v1764_v3 }
  0x76   : > { %1250 = vmatprep.subr.bf16.mxu1 %v1595_v2 }
  0x77   : > { %1241 = vmatpush3.bf16.msra.mxu0 %v1822_v12 }
  0x78   : > { %1266 = vmatprep.subr.bf16.mxu0 %v1595_v2 }
  0x79   : > { %1251 = vmatpush3.bf16.msra.mxu1 %v1775_v5 }
  0x7a   : > { %1252 = vmatprep.subr.bf16.mxu1 %v1595_v2 }
  0x7d   : > { %1253 = vmatpush3.bf16.msra.mxu1 %v1782_v7 }
  0x7e   : > { %1254 = vmatprep.subr.bf16.mxu1 %v1595_v2 }
  0x81   : > { %1255 = vmatpush3.bf16.msra.mxu1 %v1792_v9 }
  0x82   : > { %1256 = vmatprep.subr.bf16.mxu1 %v1595_v2 }
  0x85   : > { %1257 = vmatpush3.bf16.msra.mxu1 %v1804_v10 }
  0x86   : > { %1258 = vmatprep.subr.bf16.mxu1 %v1595_v2 }
  0x89   : > { %1259 = vmatpush3.bf16.msra.mxu1 %v1813_v11 }
  0x8a   : > { %1260 = vmatprep.subr.bf16.mxu1 %v1595_v2 }
  0x8d   : > { %1261 = vmatpush3.bf16.msra.mxu1 %v1822_v12 }
  0x8e   : > { %1286 = vmatprep.subr.bf16.mxu1 %v1595_v2 }
 0x12d   : > { %v440_v17 = vpop.f32.mrb[0].mxu0 }
 0x12e   : > { %v1196_v18 = vpop.f32.mrb[1].mxu0  ;;  %v441_v22 = vadd.f32 %v1866_v21, %v440_v17 }
 0x12f   : > { %v443_v19 = vpop.f32.mrb[2].mxu0 }
 0x130   : > { %v1197_v20 = vpop.f32.mrb[3].mxu0  ;;  %v444_v40 = vadd.f32 %v1866_v21, %v443_v19 }
 0x135   : > { %v448_v32 = vpop.f32.mrb[4].mxu0 }
 0x136   : > { %v1200_v33 = vpop.f32.mrb[5].mxu0  ;;  %v449_v50 = vadd.f32 %v1866_v21, %v448_v32 }
 0x137   : > { %v1891_v34 = vpop.f32.mrb[6].mxu0  ;;  %v846_v33 = vld [vmem:[#allocation7 + $0x20] sm:$0xff] (!%p1096_p0) }
 0x138   : > { %v1201_v35 = vpop.f32.mrb[7].mxu0  ;;  %v452_v60 = vadd.f32 %v1866_v21, %v1891_v34  ;;  %v847_v34 = vld [vmem:[#allocation7 + $0x28] sm:$0xff] (!%p1096_p0) }
 0x139   : > { %v1368_v35 = vpack.c.bf16 (!%p1096_p0), %v847_v34, %v846_v33 }
 0x13d   : > { %v1893_v36 = vpop.f32.mrb[8].mxu0 }
 0x13e   : > { %v1204_v37 = vpop.f32.mrb[9].mxu0 }
 0x13f   : > { %v1895_v38 = vpop.f32.mrb[10].mxu0  ;;  %v849_v37 = vld [vmem:[#allocation7 + $0x38] sm:$0xff] (!%p1096_p0) }
 0x140   : > { %v1205_v39 = vpop.f32.mrb[11].mxu0  ;;  %v460_v16 = vadd.f32 %v1866_v21, %v1895_v38 }
 0x141   : > { %v850_v39 = vld [vmem:[#allocation7 + $0x40] sm:$0xff] (!%p1096_p0) }
 0x143   : > { %v574_v23 = vpop.f32.mrb[0].mxu1 }
 0x144   : > { %v580_v24 = vadd.f32 %v574_v23, %v441_v22  ;;  %v1224_v25 = vpop.f32.mrb[1].mxu1  ;;  %v834_v23 = vstv %s1113_s19 }
 0x145   : > { %v577_v26 = vpop.f32.mrb[2].mxu1  ;;  %vm835_vm7 = vcmp.eq.s32.totalorder %v834_v23, 1 }
 0x146   : > { %1459 = vtanh.f32 %v580_v24  ;;  %v1225_v27 = vpop.f32.mrb[3].mxu1  ;;  %v842_v26 = vld [vmem:[#allocation7] sm:$0xff] (!%p1096_p0) }
 0x147   : > { %v843_v27 = vld [vmem:[#allocation7 + $0x8] sm:$0xff] (!%p1096_p0) }
 0x150   : > { %v1460_v29 = vpop.eup %1459 }
 0x151   : > { %v586_v30 = vsel %vm585_vm2, %v1460_v29, %v489_v13  ;;  %v1362_v29 = vpack.c.bf16 (!%p1096_p0), %v843_v27, %v842_v26 }
 0x152   : > { %v589_v31 = vpack.c.bf16 %v586_v30, %v586_v30 }
 0x154   : > { %1243 = vmatmul.mubr.bf16.vlgmr.msra.gmra.mrb[12].mxu0 %v589_v31  ;;  %v1599_v31 = vmov (!%p1096_p0), 0.0  }
 0x155   : > { %1267 = vmatpush3.bf16.msra.mxu0 %v1756_v1  ;;  %1282 = vmatprep.mubr.msk.bf16.mxu0 %vm1596_vm0, %v1595_v2 }
 0x156   : > { %1268 = vmatprep.subr.bf16.mxu0 %v1595_v2 }
 0x159   : > { %1269 = vmatpush3.bf16.msra.mxu0 %v1764_v3 }
 0x15a   : > { %1270 = vmatprep.subr.bf16.mxu0 %v1595_v2 }
 0x15d   : > { %1271 = vmatpush3.bf16.msra.mxu0 %v1775_v5 }
 0x15e   : > { %1272 = vmatprep.subr.bf16.mxu0 %v1595_v2 }
 0x161   : > { %1273 = vmatpush3.bf16.msra.mxu0 %v1782_v7 }
 0x162   : > { %1274 = vmatprep.subr.bf16.mxu0 %v1595_v2 }
 0x165   : > { %1275 = vmatpush3.bf16.msra.mxu0 %v1792_v9 }
 0x166   : > { %1276 = vmatprep.subr.bf16.mxu0 %v1595_v2 }
 0x169   : > { %1277 = vmatpush3.bf16.msra.mxu0 %v1804_v10 }
 0x16a   : > { %1278 = vmatprep.subr.bf16.mxu0 %v1595_v2 }
 0x16d   : > { %1279 = vmatpush3.bf16.msra.mxu0 %v1813_v11 }
 0x16e   : > { %1280 = vmatprep.subr.bf16.mxu0 %v1595_v2 }
 0x171   : > { %1281 = vmatpush3.bf16.msra.mxu0 %v1822_v12 }
 0x172   : > { %1306 = vmatprep.subr.bf16.mxu0 %v1595_v2 }
 0x227   : > { %v624_v41 = vpop.f32.mrb[12].mxu0 }
 0x228   : > { %v630_v42 = vadd.f32 %v624_v41, %v444_v40  ;;  %v1244_v43 = vpop.f32.mrb[13].mxu0  ;;  %v851_v40 = vld [vmem:[#allocation7 + $0x48] sm:$0xff] (!%p1096_p0) }
 0x229   : > { %v627_v44 = vpop.f32.mrb[14].mxu0  ;;  %v1374_v41 = vpack.c.bf16 (!%p1096_p0), %v851_v40, %v850_v39  ;;  %v853_v43 = vld [vmem:[#allocation7 + $0x58] sm:$0xff] (!%p1096_p0) }
 0x22a   : > { %1461 = vtanh.f32 %v630_v42  ;;  %v1245_v45 = vpop.f32.mrb[15].mxu0  ;;  %v852_v42 = vld [vmem:[#allocation7 + $0x50] sm:$0xff] (!%p1096_p0) }
 0x22b   : > { %v1377_v44 = vpack.c.bf16 (!%p1096_p0), %v853_v43, %v852_v42  ;;  %v854_v45 = vld [vmem:[#allocation7 + $0x60] sm:$0xff] (!%p1096_p0) }
 0x234   : > { %v1462_v47 = vpop.eup %1461 }
 0x235   : > { %v636_v48 = vsel %vm635_vm3, %v1462_v47, %v586_v30  ;;  %v845_v30 = vld [vmem:[#allocation7 + $0x18] sm:$0xff] (!%p1096_p0)  ;;  %v1380_v47 = vpack.c.bf16 (!%p1096_p0), %v855_v46, %v854_v45 }
 0x236   : > { %v639_v49 = vpack.c.bf16 %v636_v48, %v636_v48  ;;  %v1365_v32 = vpack.c.bf16 (!%p1096_p0), %v845_v30, %v844_v28 }
 0x238   : > { %1263 = vmatmul.mubr.bf16.vlgmr.msra.gmra.mrb[4].mxu1 %v639_v49  ;;  %v857_v49 = vld [vmem:[#allocation7 + $0x78] sm:$0xff] (!%p1096_p0) }
 0x239   : > { %1287 = vmatpush3.bf16.msra.mxu1 %v1756_v1  ;;  %1302 = vmatprep.mubr.msk.bf16.mxu1 %vm1596_vm0, %v1595_v2 }
 0x23a   : > { %1288 = vmatprep.subr.bf16.mxu1 %v1595_v2 }
 0x23d   : > { %1289 = vmatpush3.bf16.msra.mxu1 %v1764_v3 }
 0x23e   : > { %1290 = vmatprep.subr.bf16.mxu1 %v1595_v2 }
 0x241   : > { %1291 = vmatpush3.bf16.msra.mxu1 %v1775_v5 }
 0x242   : > { %1292 = vmatprep.subr.bf16.mxu1 %v1595_v2 }
 0x245   : > { %1293 = vmatpush3.bf16.msra.mxu1 %v1782_v7 }
 0x246   : > { %1294 = vmatprep.subr.bf16.mxu1 %v1595_v2 }
 0x249   : > { %1295 = vmatpush3.bf16.msra.mxu1 %v1792_v9 }
 0x24a   : > { %1296 = vmatprep.subr.bf16.mxu1 %v1595_v2 }
 0x24d   : > { %1297 = vmatpush3.bf16.msra.mxu1 %v1804_v10 }
 0x24e   : > { %1298 = vmatprep.subr.bf16.mxu1 %v1595_v2 }
 0x251   : > { %1299 = vmatpush3.bf16.msra.mxu1 %v1813_v11 }
 0x252   : > { %1300 = vmatprep.subr.bf16.mxu1 %v1595_v2 }
 0x255   : > { %1301 = vmatpush3.bf16.msra.mxu1 %v1822_v12 }
 0x30b   : > { %v674_v51 = vpop.f32.mrb[4].mxu1 }
 0x30c   : > { %v680_v52 = vadd.f32 %v674_v51, %v449_v50  ;;  %v1264_v53 = vpop.f32.mrb[5].mxu1  ;;  %v1097_v51 = vld [vmem:[%s1991_s6] ss:$0 sm:$0xff] (!%p1096_p0) }
 0x30d   : > { %v677_v54 = vpop.f32.mrb[6].mxu1 }
 0x30e   : > { %1463 = vtanh.f32 %v680_v52  ;;  %v1265_v55 = vpop.f32.mrb[7].mxu1 }
 0x318   : > { %v1464_v57 = vpop.eup %1463 }
 0x319   : > { %v686_v58 = vsel %vm685_vm4, %v1464_v57, %v636_v48  ;;  %v856_v48 = vld [vmem:[#allocation7 + $0x70] sm:$0xff] (!%p1096_p0) }
 0x31a   : > { %v689_v59 = vpack.c.bf16 %v686_v58, %v686_v58  ;;  %v1383_v50 = vpack.c.bf16 (!%p1096_p0), %v857_v49, %v856_v48 }
 0x31c   : > { %1283 = vmatmul.mubr.bf16.vlgmr.msra.gmra.mrb[16].mxu0 %v689_v59 }
 0x31d   : > { %1307 = vmatpush3.bf16.msra.mxu0 %v1756_v1  ;;  %1322 = vmatprep.mubr.msk.bf16.mxu0 %vm1596_vm0, %v1595_v2 }
 0x31e   : > { %1308 = vmatprep.subr.bf16.mxu0 %v1595_v2 }
 0x321   : > { %1309 = vmatpush3.bf16.msra.mxu0 %v1764_v3  ;;  %v734_v3 = vstv %s1109_s18 }
 0x322   : > { %1310 = vmatprep.subr.bf16.mxu0 %v1595_v2  ;;  %vm735_vm5 = vcmp.eq.s32.totalorder %v734_v3, 1 }
 0x325   : > { %1311 = vmatpush3.bf16.msra.mxu0 %v1775_v5 }
 0x326   : > { %1312 = vmatprep.subr.bf16.mxu0 %v1595_v2 }
 0x329   : > { %1313 = vmatpush3.bf16.msra.mxu0 %v1782_v7 }
 0x32a   : > { %1314 = vmatprep.subr.bf16.mxu0 %v1595_v2 }
 0x32d   : > { %1315 = vmatpush3.bf16.msra.mxu0 %v1792_v9 }
 0x32e   : > { %1316 = vmatprep.subr.bf16.mxu0 %v1595_v2 }
 0x331   : > { %1317 = vmatpush3.bf16.msra.mxu0 %v1804_v10 }
 0x332   : > { %1318 = vmatprep.subr.bf16.mxu0 %v1595_v2 }
 0x335   : > { %1319 = vmatpush3.bf16.msra.mxu0 %v1813_v11 }
 0x336   : > { %1320 = vmatprep.subr.bf16.mxu0 %v1595_v2  ;;  %v457_v2 = vadd.f32 %v1866_v21, %v1893_v36  ;;  %v1597_v21 = vmov (!%p1096_p0), 0.0|0.0   ;;  %v848_v36 = vld [vmem:[#allocation7 + $0x30] sm:$0xff] (!%p1096_p0) }
 0x337   : > { %v1371_v38 = vpack.c.bf16 (!%p1096_p0), %v849_v37, %v848_v36 }
 0x339   : > { %1321 = vmatpush3.bf16.msra.mxu0 %v1822_v12  ;;  %v784_v12 = vstv %s1111_s9 }
 0x33a   : > { %vm785_vm6 = vcmp.eq.s32.totalorder %v784_v12, 1  ;;  %1361 = vmatprep.subr.bf16.mxu0 (!%p1096_p0), %v1597_v21 }
 0x3ef   : > { %v724_v61 = vpop.f32.mrb[16].mxu0 }
 0x3f0   : > { %v730_v62 = vadd.f32 %v724_v61, %v452_v60  ;;  %v1284_v63 = vpop.f32.mrb[17].mxu0 }
 0x3f1   : > { %v727_v0 = vpop.f32.mrb[18].mxu0 }
 0x3f2   : > { %1465 = vtanh.f32 %v730_v62  ;;  %v1285_v1 = vpop.f32.mrb[19].mxu0 }
 0x3fc   : > { %v1466_v4 = vpop.eup %1465 }
 0x3fd   : > { %v736_v5 = vsel %vm735_vm5, %v1466_v4, %v686_v58 }
 0x3fe   : > { %v739_v6 = vpack.c.bf16 %v736_v5, %v736_v5 }
 0x400   : > { %1303 = vmatmul.mubr.bf16.vlgmr.msra.gmra.mrb[8].mxu1 %v739_v6 }
 0x4d3   : > { %v774_v7 = vpop.f32.mrb[8].mxu1 }
 0x4d4   : > { %v780_v8 = vadd.f32 %v774_v7, %v457_v2  ;;  %v1304_v9 = vpop.f32.mrb[9].mxu1 }
 0x4d5   : > { %v777_v10 = vpop.f32.mrb[10].mxu1 }
 0x4d6   : > { %1467 = vtanh.f32 %v780_v8  ;;  %v1305_v11 = vpop.f32.mrb[11].mxu1 }
 0x4e0   : > { %v1468_v13 = vpop.eup %1467 }
 0x4e1   : > { %v786_v14 = vsel %vm785_vm6, %v1468_v13, %v736_v5 }
 0x4e2   : > { %v789_v15 = vpack.c.bf16 %v786_v14, %v786_v14 }
 0x4e4   : > { %1323 = vmatmul.mubr.bf16.vlgmr.msra.gmra.mrb[20].mxu0 %v789_v15 }
 0x4e5   : > { %1358 = vmatprep.mubr.msk.f32.mxu0 (!%p1096_p0), %vm1598_vm8, %v1599_v31  ;;  %1363 = vmatpush3.bf16.msra.mxu0 (!%p1096_p0), %v1362_v29 }
 0x4e6   : > { %1364 = vmatprep.subr.bf16.mxu0 (!%p1096_p0), %v1597_v21 }
 0x4e9   : > { %1366 = vmatpush3.bf16.msra.mxu0 (!%p1096_p0), %v1365_v32 }
 0x4ea   : > { %1367 = vmatprep.subr.bf16.mxu0 (!%p1096_p0), %v1597_v21 }
 0x4ed   : > { %1369 = vmatpush3.bf16.msra.mxu0 (!%p1096_p0), %v1368_v35 }
 0x4ee   : > { %1370 = vmatprep.subr.bf16.mxu0 (!%p1096_p0), %v1597_v21 }
 0x4f1   : > { %1372 = vmatpush3.bf16.msra.mxu0 (!%p1096_p0), %v1371_v38 }
 0x4f2   : > { %1373 = vmatprep.subr.bf16.mxu0 (!%p1096_p0), %v1597_v21 }
 0x4f5   : > { %1375 = vmatpush3.bf16.msra.mxu0 (!%p1096_p0), %v1374_v41 }
 0x4f6   : > { %1376 = vmatprep.subr.bf16.mxu0 (!%p1096_p0), %v1597_v21 }
 0x4f9   : > { %1378 = vmatpush3.bf16.msra.mxu0 (!%p1096_p0), %v1377_v44 }
 0x4fa   : > { %1379 = vmatprep.subr.bf16.mxu0 (!%p1096_p0), %v1597_v21 }
 0x4fd   : > { %1381 = vmatpush3.bf16.msra.mxu0 (!%p1096_p0), %v1380_v47 }
 0x4fe   : > { %1382 = vmatprep.subr.bf16.mxu0 (!%p1096_p0), %v1597_v21 }
 0x501   : > { %1384 = vmatpush3.bf16.msra.mxu0 (!%p1096_p0), %v1383_v50 }
 0x5b7   : > { %v824_v17 = vpop.f32.mrb[20].mxu0 }
 0x5b8   : > { %v830_v18 = vadd.f32 %v824_v17, %v460_v16  ;;  %v1324_v19 = vpop.f32.mrb[21].mxu0 }
 0x5b9   : > { %v827_v20 = vpop.f32.mrb[22].mxu0 }
 0x5ba   : > { %1469 = vtanh.f32 %v830_v18  ;;  %v1325_v22 = vpop.f32.mrb[23].mxu0 }
 0x5c0   : > { %841 = sbr.rel (%p1096_p0) target bundleno = 1693 (0x69d), region = 64 }
 0x5c4   : > { %v1470_v24 = vpop.eup %1469 }
 0x5c5   : > { %v836_v25 = vsel %vm835_vm7, %v1470_v24, %v786_v14 }
 0x5c6   : > { %837 = vst [vmem:[#allocation2] sm:$0xff] %v836_v25  ;;  %1359 = vmatmul.mubr.f32.vlgmr.msra.gmra.mrb[0].mxu0 (!%p1096_p0), %v836_v25 }
 0x699   : > { %v931_v52 = vpop.f32.mrb[0].mxu0 }
 0x69a   : > { %v932_v53 = vadd.f32 %v1097_v51, %v931_v52  ;;  %v1360_v54 = vpop.f32.mrb[1].mxu0 }
 0x69c   : > { %935 = vst [vmem:[#allocation9] sm:$0xff] %v932_v53 }
 0x69d PF: > { %p1950_p1 = scmp.eq.s32.totalorder %s1038_s27, 1  ;;  %s1600_s22 = smov [#allocation9]  }
 0x69e   : > { %s945_s29 = sshll.u32 %s1600_s22, 4  ;;  %s946_s29 = int_to_ptr.vmem [resolvable:$true] %s945_s29 }
 0x69f   : > { %s1527_s12 = scalar_lea.vmem %s946_s29, 128  ;;  %p1534_p8 = scmp.lt.s32.totalorder %s946_s29, %s946_s29 }
 0x6a0   : > { %p1528_p2 = scmp.ne.s32.totalorder %s946_s29, %s1527_s12  ;;  %p1535_p6 = scmp.lt.s32.totalorder %s1527_s12, %s1527_s12 }
 0x6a2   : > { %p1529_p5 = pnand %p1528_p2, %p1950_p1  ;;  %p1536_p3 = por %p1535_p6, %p1534_p8 }
 0x6a4   : > { %p1530_p7 = pneg %p1529_p5 }
 0x6a6   : > { %p1537_p4 = pnand %p1536_p3, %p1530_p7 }
 0x6a8   : > { %1540 = shalt.err (!%p1537_p4)
}
 0x6a9   : > { %s1541_s27 = scalar_lea.hbm %s1992_s7, 128 }
 0x6aa   : > { %p1542_p9 = scmp.ne.s32.totalorder %s1992_s7, %s1541_s27  ;;  %p1547_p12 = scmp.lt.u32.totalorder %s1541_s27, %s1992_s7 }
 0x6ac   : > { %p1543_p10 = pnand %p1542_p9, %p1950_p1 }
 0x6ae   : > { %p1544_p11 = pneg %p1543_p10 }
 0x6b0   : > { %p1549_p13 = pnand %p1547_p12, %p1544_p11 }
 0x6b2   : > { %1552 = shalt.err (!%p1549_p13)
}
 0x6b3   : > { %1394 = dma.vmem_to_hbm [thread:$0]  (%p1950_p1), %s946_s29, 128, %s1992_s7, [#allocation6]  }
 0x6b4   : > { %1574 = dma.done.wait (%p1950_p1), [#allocation6], 128  }
 0x6b5   : > { %1576 = vsyncadd (%p1950_p1), [#allocation6], 4294967168 }
 0x6b6 PF: > { %s20_s26 = sadd.s32 1, %s1587_s26   ;;  %s2002_s24 = smov %s1583_s25 }
 0x6b7   : > { %p17_p0 = scmp.ge.s32.totalorder %s20_s26, 4   ;;  %s2003_s25 = smov %s2005_s28 }
 0x6b9   :  { %19 = sbr.rel (!%p17_p0) target bundleno = 4 (0x4), region = 101 }
 0x6c0   :  { %958 = vsyncpa [#allocation5], 1 }
 0x6c1   :  { %960 = vsyncpa [#allocation5 + $0x1], 1 }
 0x6c2   :  { %961 = vsyncpa [#allocation8], 1 }
 0x6c3   :  { %962 = vsyncpa [#allocation6], 1 }
 0x6c4   :  { %964 = vsyncpa [#allocation6 + $0x1], 1 }

</bundles_post_ra>
